<compile_context>
chip_gen: v7x
topology: tpu7x:2x2x1
jax: 0.10.0
libtpu: 0.0.40
codegen_flags: <defaults>
</compile_context>

<pallas_src>
import jax
import jax.numpy as jnp
import numpy as np
from jax.experimental import pallas as pl
from jax.experimental.pallas import tpu as pltpu

EPS = 1e-5  # nn.BatchNorm2d default eps


def _round_up(x, m):
    return (x + m - 1) // m * m


def _pick_tile(nwin, target):
    """Largest multiple of 8 that divides nwin and is <= target (else nwin)."""
    t = min(target, nwin)
    t -= t % 8
    while t >= 8:
        if nwin % t == 0:
            return t
        t -= 8
    return nwin


# ----------------------------------------------------------------------------
# Phase 1: conv (one fused MXU matmul per tile) + per-channel sum / sum-of-sq
# accumulation into resident outputs.
# ----------------------------------------------------------------------------
def conv_stats_kernel(p_ref, w_ref, y_ref, sum_ref, sq_ref):
    # p_ref:   (4, tile, K_pad)   im2col patches, member-outer layout
    # w_ref:   (K_pad, C_pad)     conv weight (taps x out-channels), zero padded
    # y_ref:   (4, tile, C_pad)   conv output tile (stored for phase 2)
    # sum_ref: (1, C_pad)         running per-channel sum (resident accumulator)
    # sq_ref:  (1, C_pad)         running per-channel sum of squares
    t = pl.program_id(0)
    n_mem, tile, k_pad = p_ref.shape
    c_pad = w_ref.shape[1]

    # (4, tile, K) -> (4*tile, K): layout no-op (tile % 8 == 0), one long matmul
    p = p_ref[...].reshape(n_mem * tile, k_pad)
    y = jnp.dot(p, w_ref[...], preferred_element_type=jnp.float32)
    y_ref[...] = y.reshape(n_mem, tile, c_pad)

    s = jnp.sum(y, axis=0, keepdims=True)
    q = jnp.sum(y * y, axis=0, keepdims=True)

    @pl.when(t == 0)
    def _():
        sum_ref[...] = s
        sq_ref[...] = q

    @pl.when(t > 0)
    def _():
        sum_ref[...] += s
        sq_ref[...] += q


# ----------------------------------------------------------------------------
# Phase 2: BN affine + ReLU + 2x2 max-pool (max over the 4 pool members).
# ----------------------------------------------------------------------------
def bn_relu_pool_kernel(y_ref, inv_ref, shift_ref, o_ref):
    # y_ref:     (4, tile, C_pad)
    # inv_ref:   (1, C_pad)   gamma * rsqrt(var + eps)
    # shift_ref: (1, C_pad)   beta - mean * inv
    # o_ref:     (tile, C_pad)
    inv = inv_ref[...]
    shift = shift_ref[...]
    n_mem = y_ref.shape[0]

    acc = y_ref[0] * inv + shift
    for m in range(1, n_mem):
        acc = jnp.maximum(acc, y_ref[m] * inv + shift)
    # relu(max_m(affine)) == max_m(relu(affine))
    o_ref[...] = jnp.maximum(acc, 0.0)


def adaptive_block(x, conv_w, conv_b, gamma, beta, *, tile_win=None):
    """x: NCHW (B, Cin, H, W); conv_w: (Cout, Cin, KH, KW); others: (Cout,)."""
    B, Cin, H, W = x.shape
    Cout, _, KH, KW = conv_w.shape
    assert H % 2 == 0 and W % 2 == 0, "MaxPool2d(2) expects even spatial dims"
    Ho, Wo = H // 2, W // 2
    Nwin = B * Ho * Wo                       # pooled output rows
    K = KH * KW * Cin
    K_pad = _round_up(K, 128)                # MXU-aligned contraction dim
    C_pad = _round_up(Cout, 128)             # lane-dense output channels

    # ---- wrapper glue: NCHW -> padded NHWC -> im2col, pool-member grouping ----
    x_nhwc = jnp.transpose(x, (0, 2, 3, 1)).astype(jnp.float32)
    ph, pw = KH // 2, KW // 2
    xp = jnp.pad(x_nhwc, ((0, 0), (ph, ph), (pw, pw), (0, 0)))
    cols = [xp[:, kh:kh + H, kw:kw + W, :] for kh in range(KH) for kw in range(KW)]
    patches = jnp.concatenate(cols, axis=-1)               # (B, H, W, K)
    patches = patches.reshape(B, Ho, 2, Wo, 2, K)           # (b, i, di, j, dj, k)
    patches = jnp.transpose(patches, (2, 4, 0, 1, 3, 5))    # (di, dj, b, i, j, k)
    patches = patches.reshape(4, Nwin, K)
    patches = jnp.pad(patches, ((0, 0), (0, 0), (0, K_pad - K)))

    w2 = jnp.transpose(conv_w, (2, 3, 1, 0)).reshape(K, Cout).astype(jnp.float32)
    w2 = jnp.pad(w2, ((0, K_pad - K), (0, C_pad - Cout)))
    # conv bias intentionally dropped: batch-stat BN cancels it exactly.
    del conv_b

    tile = _pick_tile(Nwin, tile_win if tile_win is not None else 512)
    n_tiles = Nwin // tile

    # ---- phase 1: conv + stats ----
    y, s, q = pl.pallas_call(
        conv_stats_kernel,
        out_shape=(
            jax.ShapeDtypeStruct((4, Nwin, C_pad), jnp.float32),
            jax.ShapeDtypeStruct((1, C_pad), jnp.float32),
            jax.ShapeDtypeStruct((1, C_pad), jnp.float32),
        ),
        grid=(n_tiles,),
        in_specs=[
            pl.BlockSpec((4, tile, K_pad), lambda t: (0, t, 0)),
            pl.BlockSpec((K_pad, C_pad), lambda t: (0, 0)),
        ],
        out_specs=(
            pl.BlockSpec((4, tile, C_pad), lambda t: (0, t, 0)),
            pl.BlockSpec((1, C_pad), lambda t: (0, 0)),   # resident accumulator
            pl.BlockSpec((1, C_pad), lambda t: (0, 0)),   # resident accumulator
        ),
        compiler_params=pltpu.CompilerParams(
            dimension_semantics=("arbitrary",),           # reduction for sum/sq
            vmem_limit_bytes=64 * 1024 * 1024,            # re-derive per gen (v5e 16MiB default, v7x 64MiB phys)
        ),
    )(patches, w2)

    # ---- tiny BN-parameter math in plain JAX (two (1, C_pad) vectors) ----
    n_total = jnp.float32(4 * Nwin)                       # = B * H * W
    mean = s / n_total
    var = jnp.maximum(q / n_total - mean * mean, 0.0)     # biased var (PyTorch norm)
    g2 = jnp.pad(gamma.astype(jnp.float32), (0, C_pad - Cout)).reshape(1, C_pad)
    be2 = jnp.pad(beta.astype(jnp.float32), (0, C_pad - Cout)).reshape(1, C_pad)
    inv = g2 * jax.lax.rsqrt(var + EPS)
    shift = be2 - mean * inv

    # ---- phase 2: BN affine + ReLU + 2x2 max-pool ----
    pooled = pl.pallas_call(
        bn_relu_pool_kernel,
        out_shape=jax.ShapeDtypeStruct((Nwin, C_pad), jnp.float32),
        grid=(n_tiles,),
        in_specs=[
            pl.BlockSpec((4, tile, C_pad), lambda t: (0, t, 0)),
            pl.BlockSpec((1, C_pad), lambda t: (0, 0)),
            pl.BlockSpec((1, C_pad), lambda t: (0, 0)),
        ],
        out_specs=pl.BlockSpec((tile, C_pad), lambda t: (t, 0)),
        compiler_params=pltpu.CompilerParams(
            dimension_semantics=("parallel",),
            vmem_limit_bytes=64 * 1024 * 1024,
        ),
    )(y, inv, shift)

    out = pooled[:, :Cout].reshape(B, Ho, Wo, Cout)
    return jnp.transpose(out, (0, 3, 1, 2))               # back to NCHW


def reference(x, conv_w, conv_b, gamma, beta):
    """Plain-JAX reference reproducing the PyTorch forward (train-mode BN)."""
    y = jax.lax.conv_general_dilated(
        x.astype(jnp.float32), conv_w.astype(jnp.float32),
        window_strides=(1, 1), padding="SAME",
        dimension_numbers=("NCHW", "OIHW", "NCHW"))
    y = y + conv_b[None, :, None, None]
    mean = jnp.mean(y, axis=(0, 2, 3), keepdims=True)
    var = jnp.mean((y - mean) ** 2, axis=(0, 2, 3), keepdims=True)
    y = (y - mean) / jnp.sqrt(var + EPS)
    y = y * gamma[None, :, None, None] + beta[None, :, None, None]
    y = jnp.maximum(y, 0.0)
    B, C, H, W = y.shape
    return y.reshape(B, C, H // 2, 2, W // 2, 2).max(axis=(3, 5))


if __name__ == "__main__":
    key = jax.random.PRNGKey(0)
    kx, kw, kb, kg, kbt = jax.random.split(key, 5)

    B, Cin, H, W = 2, 4, 16, 16
    Cout, Ksz = 8, 3

    x = jax.random.normal(kx, (B, Cin, H, W), jnp.float32)
    conv_w = 0.1 * jax.random.normal(kw, (Cout, Cin, Ksz, Ksz), jnp.float32)
    conv_b = 0.1 * jax.random.normal(kb, (Cout,), jnp.float32)
    gamma = 1.0 + 0.1 * jax.random.normal(kg, (Cout,), jnp.float32)
    beta = 0.1 * jax.random.normal(kbt, (Cout,), jnp.float32)

    # tile_win=64 keeps the tiny demo multi-tile so the cross-tile stats
    # accumulator is exercised; for production sizes use the default (512+,
    # VMEM permitting).
    out = jax.block_until_ready(
        adaptive_block(x, conv_w, conv_b, gamma, beta, tile_win=64))
    ref = jax.block_until_ready(reference(x, conv_w, conv_b, gamma, beta))

    np.testing.assert_allclose(np.asarray(out), np.asarray(ref), rtol=1e-4, atol=1e-4)
    print("KERNEL_OK")
</pallas_src>

<mosaic_0001>
module attributes {stable_mosaic.version = 11 : i64} {
  func.func @conv_stats_kernel(%arg0: i32, %arg1: memref<4x64x128xf32, #tpu.memory_space<vmem>>, %arg2: memref<128x128xf32, #tpu.memory_space<vmem>>, %arg3: memref<4x64x128xf32, #tpu.memory_space<vmem>>, %arg4: memref<1x128xf32, #tpu.memory_space<vmem>>, %arg5: memref<1x128xf32, #tpu.memory_space<vmem>>) attributes {dimension_semantics = [#tpu.dimension_semantics<arbitrary>], iteration_bounds = array<i64: 2>, scalar_prefetch = 0 : i64, scratch_operands = 0 : i64, tpu.core_type = #tpu.core_type<tc>, window_params = [{transform_indices = @transform_0, window_bounds = array<i64: 4, 64, 128>}, {pipeline_mode = #tpu.pipeline_mode<synchronous>, transform_indices = @transform_1, window_bounds = array<i64: 128, 128>}, {transform_indices = @transform_2, window_bounds = array<i64: 4, 64, 128>}, {pipeline_mode = #tpu.pipeline_mode<synchronous>, transform_indices = @transform_3, window_bounds = array<i64: 1, 128>}, {pipeline_mode = #tpu.pipeline_mode<synchronous>, transform_indices = @transform_4, window_bounds = array<i64: 1, 128>}]} {
    %c0 = arith.constant 0 : index
    %c0_0 = arith.constant 0 : index
    %c0_1 = arith.constant 0 : index
    %0 = vector.load %arg1[%c0, %c0_0, %c0_1] : memref<4x64x128xf32, #tpu.memory_space<vmem>>, vector<4x64x128xf32>
    %1 = vector.shape_cast %0 : vector<4x64x128xf32> to vector<256x128xf32>
    %c0_2 = arith.constant 0 : index
    %c0_3 = arith.constant 0 : index
    %2 = vector.load %arg2[%c0_2, %c0_3] : memref<128x128xf32, #tpu.memory_space<vmem>>, vector<128x128xf32>
    %cst = arith.constant dense<0.000000e+00> : vector<256x128xf32>
    %3 = tpu.matmul %1, %2, %cst {dimension_numbers = #tpu.dot_dimension_numbers<[1], [0], [0], [1], [0, 0, 1, 1], [], []>} : vector<256x128xf32>, vector<128x128xf32>, vector<256x128xf32> -> vector<256x128xf32>
    %4 = vector.shape_cast %3 : vector<256x128xf32> to vector<4x64x128xf32>
    %c0_4 = arith.constant 0 : index
    %c0_5 = arith.constant 0 : index
    %c0_6 = arith.constant 0 : index
    %5 = vector.load %arg3[%c0_4, %c0_5, %c0_6] : memref<4x64x128xf32, #tpu.memory_space<vmem>>, vector<4x64x128xf32>
    tpu.vector_store %arg3[%c0_4, %c0_5, %c0_6], %4 {strides = array<i32>} : memref<4x64x128xf32, #tpu.memory_space<vmem>>, vector<4x64x128xf32>,
    %cst_7 = arith.constant dense<0.000000e+00> : vector<128xf32>
    %6 = vector.multi_reduction <add>, %3, %cst_7 [0] : vector<256x128xf32> to vector<128xf32>
    %7 = vector.shape_cast %6 : vector<128xf32> to vector<1x128xf32>
    %8 = arith.mulf %3, %3 : vector<256x128xf32>
    %cst_8 = arith.constant dense<0.000000e+00> : vector<128xf32>
    %9 = vector.multi_reduction <add>, %8, %cst_8 [0] : vector<256x128xf32> to vector<128xf32>
    %10 = vector.shape_cast %9 : vector<128xf32> to vector<1x128xf32>
    %c0_i32 = arith.constant 0 : i32
    %11 = arith.cmpi eq, %arg0, %c0_i32 : i32
    %12 = arith.extui %11 : i1 to i32
    %c0_i32_9 = arith.constant 0 : i32
    %13 = arith.cmpi ne, %12, %c0_i32_9 : i32
    scf.if %13 {
      %c0_12 = arith.constant 0 : index
      %c0_13 = arith.constant 0 : index
      %17 = vector.load %arg4[%c0_12, %c0_13] : memref<1x128xf32, #tpu.memory_space<vmem>>, vector<1x128xf32>
      tpu.vector_store %arg4[%c0_12, %c0_13], %7 {strides = array<i32>} : memref<1x128xf32, #tpu.memory_space<vmem>>, vector<1x128xf32>,
      %c0_14 = arith.constant 0 : index
      %c0_15 = arith.constant 0 : index
      %18 = vector.load %arg5[%c0_14, %c0_15] : memref<1x128xf32, #tpu.memory_space<vmem>>, vector<1x128xf32>
      tpu.vector_store %arg5[%c0_14, %c0_15], %10 {strides = array<i32>} : memref<1x128xf32, #tpu.memory_space<vmem>>, vector<1x128xf32>,
    } else {
    }
    %c0_i32_10 = arith.constant 0 : i32
    %14 = arith.cmpi sgt, %arg0, %c0_i32_10 : i32
    %15 = arith.extui %14 : i1 to i32
    %c0_i32_11 = arith.constant 0 : i32
    %16 = arith.cmpi ne, %15, %c0_i32_11 : i32
    scf.if %16 {
      %c0_12 = arith.constant 0 : index
      %c0_13 = arith.constant 0 : index
      %17 = vector.load %arg4[%c0_12, %c0_13] : memref<1x128xf32, #tpu.memory_space<vmem>>, vector<1x128xf32>
      %18 = arith.addf %17, %7 : vector<1x128xf32>
      %c0_14 = arith.constant 0 : index
      %c0_15 = arith.constant 0 : index
      %19 = vector.load %arg4[%c0_14, %c0_15] : memref<1x128xf32, #tpu.memory_space<vmem>>, vector<1x128xf32>
      tpu.vector_store %arg4[%c0_14, %c0_15], %18 {strides = array<i32>} : memref<1x128xf32, #tpu.memory_space<vmem>>, vector<1x128xf32>,
      %c0_16 = arith.constant 0 : index
      %c0_17 = arith.constant 0 : index
      %20 = vector.load %arg5[%c0_16, %c0_17] : memref<1x128xf32, #tpu.memory_space<vmem>>, vector<1x128xf32>
      %21 = arith.addf %20, %10 : vector<1x128xf32>
      %c0_18 = arith.constant 0 : index
      %c0_19 = arith.constant 0 : index
      %22 = vector.load %arg5[%c0_18, %c0_19] : memref<1x128xf32, #tpu.memory_space<vmem>>, vector<1x128xf32>
      tpu.vector_store %arg5[%c0_18, %c0_19], %21 {strides = array<i32>} : memref<1x128xf32, #tpu.memory_space<vmem>>, vector<1x128xf32>,
    } else {
    }
    return
  }
  func.func @transform_0(%arg0: i32) -> (i32, i32, i32) {
    %c0_i32 = arith.constant 0 : i32
    %c0_i32_0 = arith.constant 0 : i32
    %c0_i32_1 = arith.constant 0 : i32
    return %c0_i32, %arg0, %c0_i32_0 : i32, i32, i32
  }
  func.func @transform_1(%arg0: i32) -> (i32, i32) {
    %c0_i32 = arith.constant 0 : i32
    %c0_i32_0 = arith.constant 0 : i32
    %c0_i32_1 = arith.constant 0 : i32
    return %c0_i32, %c0_i32_0 : i32, i32
  }
  func.func @transform_2(%arg0: i32) -> (i32, i32, i32) {
    %c0_i32 = arith.constant 0 : i32
    %c0_i32_0 = arith.constant 0 : i32
    %c0_i32_1 = arith.constant 0 : i32
    return %c0_i32, %arg0, %c0_i32_0 : i32, i32, i32
  }
  func.func @transform_3(%arg0: i32) -> (i32, i32) {
    %c0_i32 = arith.constant 0 : i32
    %c0_i32_0 = arith.constant 0 : i32
    %c0_i32_1 = arith.constant 0 : i32
    return %c0_i32, %c0_i32_0 : i32, i32
  }
  func.func @transform_4(%arg0: i32) -> (i32, i32) {
    %c0_i32 = arith.constant 0 : i32
    %c0_i32_0 = arith.constant 0 : i32
    %c0_i32_1 = arith.constant 0 : i32
    return %c0_i32, %c0_i32_0 : i32, i32
  }
}

</mosaic_0001>

<bundles_post_ra>
// kernel: tpu_custom_call.1
= control target key start
LH: loop header
LB: loop body
LE: loop exit
PB: predicated region body
PF: predicated region fallthrough
CT: control target
= control target key end

     0   :  { %10 = vsyncpa [#allocation3], 0  ;;  %s1674_s0 = inlined_call_operand.hbm [shape: f32[4,128,128], index: 0, kind: input, shape index: {}]   ;;  %s1675_s1 = inlined_call_operand.hbm [shape: f32[128,128], index: 1, kind: input, shape index: {}]   ;;  %s1676_s2 = inlined_call_operand.hbm [shape: f32[4,128,128], index: 2, kind: output, shape index: {0}]   ;;  %s1677_s3 = inlined_call_operand.hbm [shape: f32[1,128], index: 3, kind: output, shape index: {1}]   ;;  %s1678_s4 = inlined_call_operand.hbm [shape: f32[1,128], index: 4, kind: output, shape index: {2}]  }
   0x1   :  { %12 = vsyncpa [#allocation3 + $0x1], 0 }
   0x2   :  { %13 = vsyncpa [#allocation6], 0 }
   0x3   :  { %14 = vsyncpa [#allocation4], 0 }
   0x4   :  { %16 = vsyncpa [#allocation4 + $0x1], 0 }
   0x5   :  { %17 = vsyncpa [#allocation9], 0  ;;  %s1313_s15 = smov 0   ;;  %s1315_s16 = smov 0  }
   0x6   :  { %s1317_s17 = smov 0   ;;  %s1319_s18 = smov 0  }
   0x7 LB: > { %s1334_s19 = sadd.s32 4294967295, %s1270_s18   ;;  %s850_s20 = sadd.s32 4294967294, %s1270_s18   ;;  %s1270_s18 = sphi %s1319_s18, %s1709_s18   ;;  %s1266_s17 = sphi %s1317_s17, %s1708_s17   ;;  %s1262_s16 = sphi %s1315_s16, %s1707_s16   ;;  %s1258_s15 = sphi %s1313_s15, %s1706_s15  }
   0x8   : > { %s1338_s21 = sadd.s32 1, %s1270_s18   ;;  %s30_s22 = sadd.s32 1, %s1266_s17 }
   0x9   : > { %s27_s23 = ssub.s32 %s1270_s18, %s1338_s21  ;;  %p37_p0 = scmp.ne.s32.totalorder %s1266_s17, %s1262_s16 }
   0xa   : > { %p28_p1 = scmp.eq.s32.totalorder %s27_s23, 0  ;;  %p38_p2 = scmp.eq.s32.totalorder %s1270_s18, 0 }
   0xb   : > { %p43_p3 = scmp.ne.s32.totalorder %s1262_s16, %s1258_s15  ;;  %p1680_p4 = scmp.eq.s32.totalorder %s1334_s19, 0 }
   0xc   : > { %s1350_s24 = scalar_select %p28_p1, %s1266_s17, %s30_s22  }
   0xd   : > { %p1352_p5 = por %p38_p2, %p37_p0  ;;  %p1358_p6 = por %p1680_p4, %p43_p3 }
   0xe   : > { %p1679_p7 = scmp.eq.s32.totalorder %s1334_s19, 1  ;;  %p94_p8 = scmp.eq.s32.totalorder %s850_s20, 1 }
   0xf   : > { %s1685_s25 = scalar_select %p1352_p5, 1, 0 }
  0x10   : > { %s1686_s26 = scalar_select %p1358_p6, 1, 0 }
  0x11   : > { %p851_p9 = scmp.ge.s32.totalorder %s1270_s18, 1  ;;  %p143_p10 = scmp.lt.s32.totalorder %s1270_s18, 3 }
  0x12   : > { %p1367_p11 = por %p1679_p7, %p37_p0  ;;  %p1371_p12 = por %p94_p8, %p43_p3 }
  0x13   : > { %p1375_p13 = pnand %p851_p9, %p143_p10  ;;  %s1272_s30 = smov [#allocation5]  }
  0x14   : > { %s1687_s27 = scalar_select %p1367_p11, 1, 0 }
  0x15   : > { %s1688_s28 = scalar_select %p1371_p12, 1, 0 }
  0x16   : > { %s1689_s29 = scalar_select %p1375_p13, 1, 0 }
  0x17   : > { %p1081_p2 = pneg %p1375_p13  ;;  %s155_s5 = sshll.u32 %s1272_s30, 4  ;;  %s156_s5 = int_to_ptr.vmem [resolvable:$true] %s155_s5 }
  0x18   : > { %s1144_s9 = scalar_lea.hbm %s1675_s1, 2048 }
  0x19   : > { %p1384_p0 = pnand %p1081_p2, %p1680_p4  ;;  %p1145_p3 = scmp.ne.s32.totalorder %s1675_s1, %s1144_s9 }
  0x1a   : > { %p1151_p2 = scmp.lt.u32.totalorder %s1144_s9, %s1675_s1 }
  0x1b   : > { %p1146_p8 = pneg %p1384_p0 }
  0x1d   : > { %p1147_p9 = pnand %p1146_p8, %p1145_p3 }
  0x1f   : > { %p1148_p10 = pneg %p1147_p9 }
  0x21   : > { %p1153_p7 = pnand %p1151_p2, %p1148_p10 }
  0x23   : > { %1156 = shalt.err (!%p1153_p7)
}
  0x24   : > { %s1157_s14 = scalar_lea.vmem %s156_s5, 2048  ;;  %p1165_p11 = scmp.lt.s32.totalorder %s156_s5, %s156_s5 }
  0x25   : > { %p1158_p1 = scmp.ne.s32.totalorder %s156_s5, %s1157_s14  ;;  %p1166_p6 = scmp.lt.s32.totalorder %s1157_s14, %s1157_s14 }
  0x27   : > { %p1160_p4 = pnand %p1158_p1, %p1146_p8  ;;  %p1167_p13 = por %p1166_p6, %p1165_p11 }
  0x29   : > { %p1161_p12 = pneg %p1160_p4 }
  0x2b   : > { %p1168_p5 = pnand %p1167_p13, %p1161_p12 }
  0x2d   : > { %1171 = shalt.err (!%p1168_p5)
}
  0x2e   : > { %s1273_s20 = smov 128   ;;  %s1274_s22 = smov 8  }
  0x2f   : > { %1084 = dma.hbm_to_vmem [thread:$0]  (!%p1384_p0), %s1675_s1, 2048, %s156_s5, [#allocation6], %s1273_s20, %s1273_s20, %s1274_s22  }
  0x30   : > { %p853_p7 = scmp.ge.s32.totalorder %s1270_s18, 2 }
  0x32   : > { %165 = sbr.rel (%p853_p7) target bundleno = 71 (0x47), region = 20 }
  0x39   : > { %s169_s7 = sand.u32 1, %s1266_s17   ;;  %s874_s6 = sshll.u32 %s1270_s18, 10 }
  0x3a   : > { %s854_s8 = sshll.u32 %s169_s7, 8  ;;  %p1691_p4 = scmp.ne.s32.totalorder %s1685_s25, 0 }
  0x3b   : > { %s179_s11 = scalar_lea.hbm %s1674_s0, %s874_s6  ;;  %s173_s13 = scalar_lea.vmem [#allocation2], %s854_s8 }
  0x3c   : > { %s1054_s9 = scalar_select %p1691_p4, [#allocation0], [#allocation15] }
  0x3d   : > { %s192_s14 = sshll.u32 %s173_s13, 4  ;;  %s1275_s20 = smov 2048   ;;  %s193_s14 = int_to_ptr.vmem [resolvable:$true] %s192_s14 }
  0x3e   : > { %s184_s12 = sld [smem:[%s1054_s9]]   ;;  %s1276_s22 = smov 1024  }
  0x3f   : > { %1055 = sst [smem:[#allocation12]] (%p1691_p4), %s1275_s20  ;;  %s1277_s23 = smov 8  }
  0x40   : > { %1056 = sst [smem:[#allocation12 + $0x1]] (%p1691_p4), %s1276_s22  ;;  %s1278_s30 = smov 128  }
  0x41   : > { %1057 = sst [smem:[#allocation12 + $0x2]] (%p1691_p4), %s1277_s23  ;;  %s170_s9 = scalar_lea.sflag [#allocation3], %s169_s7 }
  0x42   : > { %1058 = sst [smem:[#allocation12 + $0x3]] (%p1691_p4), %s1278_s30  ;;  %s1279_s10 = smov [#allocation11]  }
  0x43   : > { %1059 = sst [smem:[#allocation12 + $0x4]] (%p1691_p4), %s1278_s30 }
  0x44   : > { %s857_s6 = sshll.u32 %s184_s12, 26  ;;  %1060 = sst [smem:[#allocation12 + $0x5]] (%p1691_p4), %s1277_s23 }
  0x45   : > { %s858_s8 = sadd.s32 134217728, %s857_s6 }
  0x46   : > { %1061 = dma.general (%p1691_p4), %s179_s11, 4096, %s193_s14, %s170_s9, %s1279_s10, [#allocation12], %s858_s8, 0  }
  0x47 PF: > { %p1692_p5 = scmp.ne.s32.totalorder %s1689_s29, 0 }
  0x48   : > { %s1431_s5 = sand.u32 (!%p1692_p5), 1, %s1262_s16   ;;  %p1693_p6 = scmp.ne.s32.totalorder (!%p1692_p5), %s1686_s26, 0 }
  0x49   : > { %217 = sbr.rel (%p1692_p5) target bundleno = 480 (0x1e0), region = 28  ;;  %s860_s13 = sshll.u32 (!%p1692_p5), %s1431_s5, 8 }
  0x4a   : > { %s220_s12 = scalar_lea.sflag (!%p1692_p5), [#allocation3], %s1431_s5  ;;  %s1437_s20 = scalar_lea.vmem (!%p1692_p5), [#allocation2], %s860_s13 }
  0x50   : > { %1241 = dma.done.wait (%p1693_p6), %s220_s12, 4096  }
  0x51   : > { %1243 = vsyncadd (%p1693_p6), %s220_s12, 4294963200  ;;  %p1694_p11 = scmp.eq.s32.totalorder %s1334_s19, 0 }
  0x53   : > { %1245 = dma.done.wait (%p1694_p11), [#allocation6], 2048   ;;  %p1695_p12 = pmov %p1694_p11 }
  0x54   : > { %v286_v0 = vld [vmem:[#allocation5] sm:$0xff]  ;;  %v287_v1 = vld [vmem:[#allocation5 + $0x8] sm:$0xff]  ;;  %v288_v2 = vld [vmem:[#allocation5 + $0x10] sm:$0xff]  ;;  %s1483_s25 = scalar_lea.vmem [#allocation7], %s860_s13  ;;  %p1696_p13 = scmp.ne.s32.totalorder %s1334_s19, 0 }
  0x55   : > { %1247 = vsyncadd (%p1695_p12), [#allocation6], 4294965248  ;;  %v1004_v3 = vpack.c.bf16 %v287_v1, %v286_v0  ;;  %v289_v4 = vld [vmem:[#allocation5 + $0x18] sm:$0xff]  ;;  %v290_v6 = vld [vmem:[#allocation5 + $0x20] sm:$0xff] }
  0x56   : > { %v1008_v5 = vpack.c.bf16 %v289_v4, %v288_v2  ;;  %v291_v7 = vld [vmem:[#allocation5 + $0x28] sm:$0xff]  ;;  %v254_v9 = vld [vmem:[%s1437_s20] sm:$0xff]  ;;  %v292_v10 = vld [vmem:[#allocation5 + $0x30] sm:$0xff] }
  0x57   : > { %1005 = vmatprep.subr.bf16.mxu0 %v1004_v3  ;;  %1036 = vmatprep.subr.bf16.mxu1 %v1004_v3  ;;  %v1012_v8 = vpack.c.bf16 %v291_v7, %v290_v6  ;;  %v293_v11 = vld [vmem:[#allocation5 + $0x38] sm:$0xff]  ;;  %v294_v13 = vld [vmem:[#allocation5 + $0x40] sm:$0xff]  ;;  %v295_v14 = vld [vmem:[#allocation5 + $0x48] sm:$0xff] }
  0x58   : > { %1007 = vmatpush3.bf16.msra.mxu0 %v1004_v3  ;;  %1044 = vmatpush3.bf16.msra.mxu1 %v1004_v3  ;;  %v1016_v12 = vpack.c.bf16 %v293_v11, %v292_v10  ;;  %v270_v15 = vld [vmem:[%s1437_s20 + $0x80] sm:$0xff]  ;;  %v1020_v16 = vpack.c.bf16 %v295_v14, %v294_v13  ;;  %v296_v17 = vld [vmem:[#allocation5 + $0x50] sm:$0xff]  ;;  %v297_v18 = vld [vmem:[#allocation5 + $0x58] sm:$0xff] }
  0x59   : > { %1009 = vmatprep.subr.bf16.mxu0 %v1008_v5  ;;  %1037 = vmatprep.subr.bf16.mxu1 %v1008_v5  ;;  %v1024_v19 = vpack.c.bf16 %v297_v18, %v296_v17  ;;  %v298_v20 = vld [vmem:[#allocation5 + $0x60] sm:$0xff]  ;;  %v299_v21 = vld [vmem:[#allocation5 + $0x68] sm:$0xff]  ;;  %v300_v23 = vld [vmem:[#allocation5 + $0x70] sm:$0xff] }
  0x5a   : > { %956 = vmatprep.mubr.f32.mxu0 %v254_v9  ;;  %980 = vmatprep.mubr.f32.mxu1 %v270_v15  ;;  %v1028_v22 = vpack.c.bf16 %v299_v21, %v298_v20  ;;  %v301_v24 = vld [vmem:[#allocation5 + $0x78] sm:$0xff]  ;;  %v255_v26 = vld [vmem:[%s1437_s20 + $0x8] sm:$0xff]  ;;  %v256_v28 = vld [vmem:[%s1437_s20 + $0x10] sm:$0xff] }
  0x5b   : > { %v1032_v25 = vpack.c.bf16 %v301_v24, %v300_v23  ;;  %v271_v27 = vld [vmem:[%s1437_s20 + $0x88] sm:$0xff]  ;;  %v272_v29 = vld [vmem:[%s1437_s20 + $0x90] sm:$0xff]  ;;  %v257_v30 = vld [vmem:[%s1437_s20 + $0x18] sm:$0xff] }
  0x5c   : > { %1011 = vmatpush3.bf16.msra.mxu0 %v1008_v5  ;;  %1045 = vmatpush3.bf16.msra.mxu1 %v1008_v5  ;;  %v273_v31 = vld [vmem:[%s1437_s20 + $0x98] sm:$0xff]  ;;  %v258_v32 = vld [vmem:[%s1437_s20 + $0x20] sm:$0xff]  ;;  %v259_v34 = vld [vmem:[%s1437_s20 + $0x28] sm:$0xff] }
  0x5d   : > { %1013 = vmatprep.subr.bf16.mxu0 %v1012_v8  ;;  %1038 = vmatprep.subr.bf16.mxu1 %v1012_v8  ;;  %v274_v33 = vld [vmem:[%s1437_s20 + $0xa0] sm:$0xff]  ;;  %v275_v35 = vld [vmem:[%s1437_s20 + $0xa8] sm:$0xff]  ;;  %v260_v36 = vld [vmem:[%s1437_s20 + $0x30] sm:$0xff] }
  0x5e   : > { %v276_v37 = vld [vmem:[%s1437_s20 + $0xb0] sm:$0xff]  ;;  %v261_v38 = vld [vmem:[%s1437_s20 + $0x38] sm:$0xff]  ;;  %v262_v40 = vld [vmem:[%s1437_s20 + $0x40] sm:$0xff] }
  0x5f   : > { %v277_v39 = vld [vmem:[%s1437_s20 + $0xb8] sm:$0xff]  ;;  %v278_v41 = vld [vmem:[%s1437_s20 + $0xc0] sm:$0xff]  ;;  %v263_v42 = vld [vmem:[%s1437_s20 + $0x48] sm:$0xff] }
  0x60   : > { %1015 = vmatpush3.bf16.msra.mxu0 %v1012_v8  ;;  %1046 = vmatpush3.bf16.msra.mxu1 %v1012_v8  ;;  %v279_v43 = vld [vmem:[%s1437_s20 + $0xc8] sm:$0xff]  ;;  %v264_v44 = vld [vmem:[%s1437_s20 + $0x50] sm:$0xff]  ;;  %v265_v46 = vld [vmem:[%s1437_s20 + $0x58] sm:$0xff] }
  0x61   : > { %1017 = vmatprep.subr.bf16.mxu0 %v1016_v12  ;;  %1039 = vmatprep.subr.bf16.mxu1 %v1016_v12  ;;  %v280_v45 = vld [vmem:[%s1437_s20 + $0xd0] sm:$0xff]  ;;  %v281_v47 = vld [vmem:[%s1437_s20 + $0xd8] sm:$0xff]  ;;  %v266_v48 = vld [vmem:[%s1437_s20 + $0x60] sm:$0xff] }
  0x62   : > { %v282_v49 = vld [vmem:[%s1437_s20 + $0xe0] sm:$0xff]  ;;  %v267_v50 = vld [vmem:[%s1437_s20 + $0x68] sm:$0xff]  ;;  %v268_v52 = vld [vmem:[%s1437_s20 + $0x70] sm:$0xff] }
  0x63   : > { %v283_v51 = vld [vmem:[%s1437_s20 + $0xe8] sm:$0xff]  ;;  %v284_v53 = vld [vmem:[%s1437_s20 + $0xf0] sm:$0xff]  ;;  %v269_v54 = vld [vmem:[%s1437_s20 + $0x78] sm:$0xff] }
  0x64   : > { %1019 = vmatpush3.bf16.msra.mxu0 %v1016_v12  ;;  %1047 = vmatpush3.bf16.msra.mxu1 %v1016_v12  ;;  %v285_v55 = vld [vmem:[%s1437_s20 + $0xf8] sm:$0xff] }
  0x65   : > { %1021 = vmatprep.subr.bf16.mxu0 %v1020_v16  ;;  %1040 = vmatprep.subr.bf16.mxu1 %v1020_v16 }
  0x68   : > { %1023 = vmatpush3.bf16.msra.mxu0 %v1020_v16  ;;  %1048 = vmatpush3.bf16.msra.mxu1 %v1020_v16 }
  0x69   : > { %1025 = vmatprep.subr.bf16.mxu0 %v1024_v19  ;;  %1041 = vmatprep.subr.bf16.mxu1 %v1024_v19 }
  0x6c   : > { %1027 = vmatpush3.bf16.msra.mxu0 %v1024_v19  ;;  %1049 = vmatpush3.bf16.msra.mxu1 %v1024_v19 }
  0x6d   : > { %1029 = vmatprep.subr.bf16.mxu0 %v1028_v22  ;;  %1042 = vmatprep.subr.bf16.mxu1 %v1028_v22 }
  0x70   : > { %1031 = vmatpush3.bf16.msra.mxu0 %v1028_v22  ;;  %1050 = vmatpush3.bf16.msra.mxu1 %v1028_v22 }
  0x71   : > { %1033 = vmatprep.subr.bf16.mxu0 %v1032_v25  ;;  %1043 = vmatprep.subr.bf16.mxu1 %v1032_v25 }
  0x74   : > { %1035 = vmatpush3.bf16.msra.mxu0 %v1032_v25  ;;  %1051 = vmatpush3.bf16.msra.mxu1 %v1032_v25 }
  0x77   : > { %957 = vmatmul.mubr.f32.vlgmr.msra.gmra.mrb[0].mxu0 %v255_v26  ;;  %981 = vmatmul.mubr.f32.vlgmr.msra.gmra.mrb[0].mxu1 %v271_v27 }
  0x78   : > { %959 = vmatprep.mubr.f32.mxu0 %v256_v28  ;;  %983 = vmatprep.mubr.f32.mxu1 %v272_v29 }
  0x7b   : > { %960 = vmatmul.mubr.f32.gmra.mrb[2].mxu0 %v257_v30  ;;  %984 = vmatmul.mubr.f32.gmra.mrb[2].mxu1 %v273_v31 }
  0x7c   : > { %962 = vmatprep.mubr.f32.mxu0 %v258_v32  ;;  %986 = vmatprep.mubr.f32.mxu1 %v274_v33 }
  0x7f   : > { %963 = vmatmul.mubr.f32.gmra.mrb[4].mxu0 %v259_v34  ;;  %987 = vmatmul.mubr.f32.gmra.mrb[4].mxu1 %v275_v35 }
  0x80   : > { %965 = vmatprep.mubr.f32.mxu0 %v260_v36  ;;  %989 = vmatprep.mubr.f32.mxu1 %v276_v37 }
  0x83   : > { %966 = vmatmul.mubr.f32.gmra.mrb[6].mxu0 %v261_v38  ;;  %990 = vmatmul.mubr.f32.gmra.mrb[6].mxu1 %v277_v39 }
  0x84   : > { %968 = vmatprep.mubr.f32.mxu0 %v262_v40  ;;  %992 = vmatprep.mubr.f32.mxu1 %v278_v41 }
  0x87   : > { %969 = vmatmul.mubr.f32.gmra.mrb[8].mxu0 %v263_v42  ;;  %993 = vmatmul.mubr.f32.gmra.mrb[8].mxu1 %v279_v43 }
  0x88   : > { %971 = vmatprep.mubr.f32.mxu0 %v264_v44  ;;  %995 = vmatprep.mubr.f32.mxu1 %v280_v45 }
  0x8b   : > { %972 = vmatmul.mubr.f32.gmra.mrb[10].mxu0 %v265_v46  ;;  %996 = vmatmul.mubr.f32.gmra.mrb[10].mxu1 %v281_v47 }
  0x8c   : > { %974 = vmatprep.mubr.f32.mxu0 %v266_v48  ;;  %998 = vmatprep.mubr.f32.mxu1 %v282_v49 }
  0x8f   : > { %975 = vmatmul.mubr.f32.gmra.mrb[12].mxu0 %v267_v50  ;;  %999 = vmatmul.mubr.f32.gmra.mrb[12].mxu1 %v283_v51 }
  0x90   : > { %977 = vmatprep.mubr.f32.mxu0 %v268_v52  ;;  %1001 = vmatprep.mubr.f32.mxu1 %v284_v53 }
  0x93   : > { %978 = vmatmul.mubr.f32.gmra.mrb[14].mxu0 %v269_v54  ;;  %1002 = vmatmul.mubr.f32.gmra.mrb[14].mxu1 %v285_v55 }
 0x14a   : > { %v958_v56 = vpop.f32.mrb[0].mxu0  ;;  %v1479_v57 = vpop.f32.mrb[0].mxu1 }
 0x14b   : > { %528 = vst [vmem:[%s1483_s25 + $0x8] sm:$0xff] %v958_v56  ;;  %v597_v58 = vmul.f32 %v958_v56, %v958_v56  ;;  %v368_v59 = vpop.f32.mrb[1].mxu0  ;;  %544 = vst [vmem:[%s1483_s25 + $0x88] sm:$0xff] %v1479_v57  ;;  %v1488_v60 = vpop.f32.mrb[1].mxu1 }
 0x14c   : > { %527 = vst [vmem:[%s1483_s25] sm:$0xff] %v368_v59  ;;  %v559_v61 = vadd.f32 %v958_v56, %v368_v59  ;;  %v596_v62 = vmul.f32 %v368_v59, %v368_v59  ;;  %543 = vst [vmem:[%s1483_s25 + $0x80] sm:$0xff] %v1488_v60 }
 0x14e   : > { %v628_v63 = vadd.f32 %v597_v58, %v596_v62  ;;  %v961_v0 = vpop.f32.mrb[2].mxu0  ;;  %v1493_v1 = vpop.f32.mrb[2].mxu1 }
 0x14f   : > { %530 = vst [vmem:[%s1483_s25 + $0x18] sm:$0xff] %v961_v0  ;;  %v378_v2 = vpop.f32.mrb[3].mxu0  ;;  %546 = vst [vmem:[%s1483_s25 + $0x98] sm:$0xff] %v1493_v1  ;;  %v1498_v3 = vpop.f32.mrb[3].mxu1  ;;  %v599_v6 = vmul.f32 %v961_v0, %v961_v0 }
 0x150   : > { %529 = vst [vmem:[%s1483_s25 + $0x10] sm:$0xff] %v378_v2  ;;  %v560_v4 = vadd.f32 %v559_v61, %v378_v2  ;;  %v598_v5 = vmul.f32 %v378_v2, %v378_v2  ;;  %545 = vst [vmem:[%s1483_s25 + $0x90] sm:$0xff] %v1498_v3 }
 0x152   : > { %v629_v7 = vadd.f32 %v628_v63, %v598_v5  ;;  %v964_v8 = vpop.f32.mrb[4].mxu0  ;;  %v561_v9 = vadd.f32 %v961_v0, %v560_v4  ;;  %v1503_v10 = vpop.f32.mrb[4].mxu1 }
 0x153   : > { %532 = vst [vmem:[%s1483_s25 + $0x28] sm:$0xff] %v964_v8  ;;  %v388_v11 = vpop.f32.mrb[5].mxu0  ;;  %548 = vst [vmem:[%s1483_s25 + $0xa8] sm:$0xff] %v1503_v10  ;;  %v1508_v12 = vpop.f32.mrb[5].mxu1  ;;  %v601_v16 = vmul.f32 %v964_v8, %v964_v8 }
 0x154   : > { %531 = vst [vmem:[%s1483_s25 + $0x20] sm:$0xff] %v388_v11  ;;  %v562_v13 = vadd.f32 %v561_v9, %v388_v11  ;;  %v600_v14 = vmul.f32 %v388_v11, %v388_v11  ;;  %v630_v15 = vadd.f32 %v629_v7, %v599_v6  ;;  %547 = vst [vmem:[%s1483_s25 + $0xa0] sm:$0xff] %v1508_v12 }
 0x155   : > { %v612_v9 = vmul.f32 %v1488_v60, %v1488_v60 }
 0x156   : > { %v631_v17 = vadd.f32 %v630_v15, %v600_v14  ;;  %v967_v18 = vpop.f32.mrb[6].mxu0  ;;  %v563_v19 = vadd.f32 %v964_v8, %v562_v13  ;;  %v1513_v20 = vpop.f32.mrb[6].mxu1  ;;  %v613_v14 = vmul.f32 %v1479_v57, %v1479_v57 }
 0x157   : > { %534 = vst [vmem:[%s1483_s25 + $0x38] sm:$0xff] %v967_v18  ;;  %v398_v21 = vpop.f32.mrb[7].mxu0  ;;  %550 = vst [vmem:[%s1483_s25 + $0xb8] sm:$0xff] %v1513_v20  ;;  %v1518_v22 = vpop.f32.mrb[7].mxu1  ;;  %v603_v26 = vmul.f32 %v967_v18, %v967_v18 }
 0x158   : > { %533 = vst [vmem:[%s1483_s25 + $0x30] sm:$0xff] %v398_v21  ;;  %v564_v23 = vadd.f32 %v563_v19, %v398_v21  ;;  %v602_v24 = vmul.f32 %v398_v21, %v398_v21  ;;  %v632_v25 = vadd.f32 %v631_v17, %v601_v16  ;;  %549 = vst [vmem:[%s1483_s25 + $0xb0] sm:$0xff] %v1518_v22 }
 0x159   : > { %v614_v17 = vmul.f32 %v1498_v3, %v1498_v3  ;;  %v615_v21 = vmul.f32 %v1493_v1, %v1493_v1 }
 0x15a   : > { %v633_v27 = vadd.f32 %v632_v25, %v602_v24  ;;  %v970_v28 = vpop.f32.mrb[8].mxu0  ;;  %v565_v29 = vadd.f32 %v967_v18, %v564_v23  ;;  %v1523_v30 = vpop.f32.mrb[8].mxu1 }
 0x15b   : > { %536 = vst [vmem:[%s1483_s25 + $0x48] sm:$0xff] %v970_v28  ;;  %v408_v31 = vpop.f32.mrb[9].mxu0  ;;  %552 = vst [vmem:[%s1483_s25 + $0xc8] sm:$0xff] %v1523_v30  ;;  %v1528_v32 = vpop.f32.mrb[9].mxu1  ;;  %v605_v36 = vmul.f32 %v970_v28, %v970_v28 }
 0x15c   : > { %535 = vst [vmem:[%s1483_s25 + $0x40] sm:$0xff] %v408_v31  ;;  %v566_v33 = vadd.f32 %v565_v29, %v408_v31  ;;  %v604_v34 = vmul.f32 %v408_v31, %v408_v31  ;;  %v634_v35 = vadd.f32 %v633_v27, %v603_v26  ;;  %551 = vst [vmem:[%s1483_s25 + $0xc0] sm:$0xff] %v1528_v32 }
 0x15e   : > { %v635_v37 = vadd.f32 %v634_v35, %v604_v34  ;;  %v973_v38 = vpop.f32.mrb[10].mxu0  ;;  %v567_v39 = vadd.f32 %v970_v28, %v566_v33  ;;  %v1533_v40 = vpop.f32.mrb[10].mxu1 }
 0x15f   : > { %538 = vst [vmem:[%s1483_s25 + $0x58] sm:$0xff] %v973_v38  ;;  %v418_v41 = vpop.f32.mrb[11].mxu0  ;;  %554 = vst [vmem:[%s1483_s25 + $0xd8] sm:$0xff] %v1533_v40  ;;  %v1538_v42 = vpop.f32.mrb[11].mxu1  ;;  %v607_v46 = vmul.f32 %v973_v38, %v973_v38 }
 0x160   : > { %537 = vst [vmem:[%s1483_s25 + $0x50] sm:$0xff] %v418_v41  ;;  %v568_v43 = vadd.f32 %v567_v39, %v418_v41  ;;  %v606_v44 = vmul.f32 %v418_v41, %v418_v41  ;;  %v636_v45 = vadd.f32 %v635_v37, %v605_v36  ;;  %553 = vst [vmem:[%s1483_s25 + $0xd0] sm:$0xff] %v1538_v42 }
 0x162   : > { %v637_v47 = vadd.f32 %v636_v45, %v606_v44  ;;  %v976_v48 = vpop.f32.mrb[12].mxu0  ;;  %v569_v49 = vadd.f32 %v973_v38, %v568_v43  ;;  %v1543_v50 = vpop.f32.mrb[12].mxu1 }
 0x163   : > { %540 = vst [vmem:[%s1483_s25 + $0x68] sm:$0xff] %v976_v48  ;;  %v428_v51 = vpop.f32.mrb[13].mxu0  ;;  %556 = vst [vmem:[%s1483_s25 + $0xe8] sm:$0xff] %v1543_v50  ;;  %v508_v52 = vpop.f32.mrb[13].mxu1  ;;  %v609_v56 = vmul.f32 %v976_v48, %v976_v48 }
 0x164   : > { %539 = vst [vmem:[%s1483_s25 + $0x60] sm:$0xff] %v428_v51  ;;  %v570_v53 = vadd.f32 %v569_v49, %v428_v51  ;;  %v608_v54 = vmul.f32 %v428_v51, %v428_v51  ;;  %v638_v55 = vadd.f32 %v637_v47, %v607_v46  ;;  %555 = vst [vmem:[%s1483_s25 + $0xe0] sm:$0xff] %v508_v52 }
 0x165   : > { %v625_v47 = vmul.f32 %v1543_v50, %v1543_v50 }
 0x166   : > { %v639_v58 = vadd.f32 %v638_v55, %v608_v54  ;;  %v979_v59 = vpop.f32.mrb[14].mxu0  ;;  %v571_v61 = vadd.f32 %v976_v48, %v570_v53  ;;  %v1003_v62 = vpop.f32.mrb[14].mxu1 }
 0x167   : > { %542 = vst [vmem:[%s1483_s25 + $0x78] sm:$0xff] %v979_v59  ;;  %v438_v63 = vpop.f32.mrb[15].mxu0  ;;  %558 = vst [vmem:[%s1483_s25 + $0xf8] sm:$0xff] %v1003_v62  ;;  %v518_v0 = vpop.f32.mrb[15].mxu1  ;;  %v611_v6 = vmul.f32 %v979_v59, %v979_v59 }
 0x168   : > { %541 = vst [vmem:[%s1483_s25 + $0x70] sm:$0xff] %v438_v63  ;;  %v572_v2 = vadd.f32 %v571_v61, %v438_v63  ;;  %v610_v4 = vmul.f32 %v438_v63, %v438_v63  ;;  %v640_v5 = vadd.f32 %v639_v58, %v609_v56  ;;  %557 = vst [vmem:[%s1483_s25 + $0xf0] sm:$0xff] %v518_v0 }
 0x169   : > { %v626_v49 = vmul.f32 %v518_v0, %v518_v0 }
 0x16a   : > { %v573_v7 = vadd.f32 %v979_v59, %v572_v2  ;;  %v641_v8 = vadd.f32 %v640_v5, %v610_v4 }
 0x16c   : > { %v642_v11 = vadd.f32 %v641_v8, %v611_v6  ;;  %v574_v13 = vadd.f32 %v573_v7, %v1488_v60  ;;  %v616_v60 = vmul.f32 %v1508_v12, %v1508_v12 }
 0x16e   : > { %v643_v15 = vadd.f32 %v642_v11, %v612_v9  ;;  %v575_v16 = vadd.f32 %v1479_v57, %v574_v13  ;;  %v617_v57 = vmul.f32 %v1503_v10, %v1503_v10 }
 0x170   : > { %v576_v18 = vadd.f32 %v575_v16, %v1498_v3  ;;  %v644_v19 = vadd.f32 %v643_v15, %v613_v14  ;;  %v618_v3 = vmul.f32 %v1518_v22, %v1518_v22 }
 0x172   : > { %v645_v23 = vadd.f32 %v644_v19, %v614_v17  ;;  %v577_v24 = vadd.f32 %v1493_v1, %v576_v18  ;;  %v619_v1 = vmul.f32 %v1513_v20, %v1513_v20 }
 0x174   : > { %v578_v25 = vadd.f32 %v577_v24, %v1508_v12  ;;  %v646_v26 = vadd.f32 %v645_v23, %v615_v21  ;;  %v620_v12 = vmul.f32 %v1528_v32, %v1528_v32 }
 0x176   : > { %v647_v27 = vadd.f32 %v646_v26, %v616_v60  ;;  %v579_v28 = vadd.f32 %v1503_v10, %v578_v25  ;;  %v621_v10 = vmul.f32 %v1523_v30, %v1523_v30 }
 0x178   : > { %v580_v29 = vadd.f32 %v579_v28, %v1518_v22  ;;  %v648_v31 = vadd.f32 %v647_v27, %v617_v57  ;;  %v622_v22 = vmul.f32 %v1538_v42, %v1538_v42 }
 0x17a   : > { %v649_v33 = vadd.f32 %v648_v31, %v618_v3  ;;  %v581_v34 = vadd.f32 %v1513_v20, %v580_v29  ;;  %v623_v20 = vmul.f32 %v1533_v40, %v1533_v40 }
 0x17c   : > { %v582_v35 = vadd.f32 %v581_v34, %v1528_v32  ;;  %v650_v36 = vadd.f32 %v649_v33, %v619_v1  ;;  %v624_v32 = vmul.f32 %v508_v52, %v508_v52 }
 0x17e   : > { %v651_v37 = vadd.f32 %v650_v36, %v620_v12  ;;  %v583_v38 = vadd.f32 %v1523_v30, %v582_v35 }
 0x180   : > { %v584_v39 = vadd.f32 %v583_v38, %v1538_v42  ;;  %v652_v41 = vadd.f32 %v651_v37, %v621_v10  ;;  %v627_v42 = vmul.f32 %v1003_v62, %v1003_v62 }
 0x182   : > { %v653_v43 = vadd.f32 %v652_v41, %v622_v22  ;;  %v585_v44 = vadd.f32 %v1533_v40, %v584_v39 }
 0x184   : > { %v586_v45 = vadd.f32 %v585_v44, %v508_v52  ;;  %v654_v46 = vadd.f32 %v653_v43, %v623_v20 }
 0x186   : > { %v655_v48 = vadd.f32 %v654_v46, %v624_v32  ;;  %v587_v30 = vadd.f32 %v1543_v50, %v586_v45 }
 0x188   : > { %v588_v51 = vadd.f32 %v587_v30, %v518_v0  ;;  %v656_v53 = vadd.f32 %v655_v48, %v625_v47 }
 0x18a   : > { %v589_v54 = vadd.f32 %v1003_v62, %v588_v51  ;;  %v657_v55 = vadd.f32 %v656_v53, %v626_v49 }
 0x18c   : > { %v590_v56 = vrot.slane %v589_v54, 4  ;;  %v658_v58 = vadd.f32 %v657_v55, %v627_v42 }
 0x18e   : > { %v591_v59 = vadd.f32 %v590_v56, %v589_v54  ;;  %v659_v61 = vrot.slane %v658_v58, 4 }
 0x190   : > { %v592_v40 = vrot.slane %v591_v59, 2  ;;  %v660_v63 = vadd.f32 %v659_v61, %v658_v58 }
 0x192   : > { %v593_v52 = vadd.f32 %v592_v40, %v591_v59  ;;  %v661_v2 = vrot.slane %v660_v63, 2  ;;  %668 = sbr.rel (%p1696_p13) target bundleno = 411 (0x19b), region = 40 }
 0x194   : > { %v594_v4 = vrot.slane %v593_v52, 1  ;;  %v662_v5 = vadd.f32 %v661_v2, %v660_v63 }
 0x196   : > { %v595_v6 = vadd.f32 %v594_v4, %v593_v52  ;;  %v663_v7 = vrot.slane %v662_v5, 1 }
 0x198   : > { %v664_v8 = vadd.f32 %v663_v7, %v662_v5  ;;  %669 = vst [vmem:[#allocation8] sm:$0x1] (!%p1696_p13), %v595_v6 }
 0x19a   : > { %670 = vst [vmem:[#allocation10] sm:$0x1] %v664_v8 }
 0x19b PF: > { %p864_p1 = scmp.le.s32.totalorder %s1334_s19, 0 }
 0x19d   : > { %674 = sbr.rel (%p864_p1) target bundleno = 421 (0x1a5), region = 44 }
 0x1a1   : > { %v675_v50 = vld [vmem:[#allocation8] sm:$0x1] (!%p864_p1)  ;;  %v678_v62 = vld [vmem:[#allocation10] sm:$0x1] (!%p864_p1) }
 0x1a2   : > { %v676_v0 = vadd.f32 (!%p864_p1), %v675_v50, %v595_v6  ;;  %v679_v9 = vadd.f32 (!%p864_p1), %v678_v62, %v664_v8 }
 0x1a4   : > { %677 = vst [vmem:[#allocation8] sm:$0x1] %v676_v0  ;;  %680 = vst [vmem:[#allocation10] sm:$0x1] %v679_v9 }
 0x1a5 PF: > { %s682_s26 = scalar_lea.sflag [#allocation4], %s1431_s5 }
 0x1a6   : > { %s875_s29 = sshll.u32 %s1334_s19, 10  ;;  %s711_s7 = sshll.u32 %s1483_s25, 4  ;;  %s712_s7 = int_to_ptr.vmem [resolvable:$true] %s711_s7 }
 0x1a7   : > { %s694_s22 = scalar_lea.hbm %s1676_s2, %s875_s29  ;;  %s1280_s23 = smov 1024  }
 0x1a8   : > { %p1697_p0 = scmp.ne.s32.totalorder %s1687_s27, 0  ;;  %s1281_s30 = smov 2048  }
 0x1a9   : > { %s1282_s6 = smov 8   ;;  %s1283_s8 = smov 128  }
 0x1aa   : > { %1065 = sst [smem:[#allocation14]] (%p1697_p0), %s1280_s23  ;;  %s1284_s9 = smov [#allocation13]  }
 0x1ab   : > { %1066 = sst [smem:[#allocation14 + $0x1]] (%p1697_p0), %s1281_s30  ;;  %s1285_s10 = smov 0  }
 0x1ac   : > { %1067 = sst [smem:[#allocation14 + $0x2]] (%p1697_p0), %s1282_s6  ;;  %s1286_s5 = smov [#allocation8]  }
 0x1ad   : > { %1068 = sst [smem:[#allocation14 + $0x3]] (%p1697_p0), %s1283_s8  ;;  %s738_s13 = sshll.u32 %s1286_s5, 4  ;;  %s739_s13 = int_to_ptr.vmem [resolvable:$true] %s738_s13 }
 0x1ae   : > { %1069 = sst [smem:[#allocation14 + $0x4]] (%p1697_p0), %s1283_s8  ;;  %s1287_s12 = smov [#allocation10]  }
 0x1af   : > { %1070 = sst [smem:[#allocation14 + $0x5]] (%p1697_p0), %s1282_s6  ;;  %s749_s20 = sshll.u32 %s1287_s12, 4  ;;  %s750_s20 = int_to_ptr.vmem [resolvable:$true] %s749_s20 }
 0x1b0   : > { %1071 = dma.general (%p1697_p0), %s712_s7, 4096, %s694_s22, %s682_s26, %s1284_s9, [#allocation14], %s1285_s10, 0  }
 0x1b1   : > { %s1172_s25 = scalar_lea.vmem %s739_s13, 16  ;;  %p1698_p8 = scmp.eq.s32.totalorder %s1334_s19, 1 }
 0x1b2   : > { %p1173_p3 = scmp.ne.s32.totalorder %s739_s13, %s1172_s25  ;;  %s1178_s29 = scalar_lea.vmem %s739_s13, 32 }
 0x1b3   : > { %p1179_p2 = scmp.lt.s32.totalorder %s739_s13, %s739_s13  ;;  %p1180_p4 = scmp.lt.s32.totalorder %s1178_s29, %s1172_s25 }
 0x1b4   : > { %p1174_p9 = pnand %p1173_p3, %p1698_p8 }
 0x1b5   : > { %p1181_p5 = por %p1180_p4, %p1179_p2 }
 0x1b6   : > { %p1175_p10 = pneg %p1174_p9 }
 0x1b8   : > { %p1182_p6 = pnand %p1181_p5, %p1175_p10 }
 0x1ba   : > { %1185 = shalt.err (!%p1182_p6)
}
 0x1bb   : > { %s1186_s26 = scalar_lea.hbm %s1677_s3, 16  ;;  %p1699_p12 = pmov %p1698_p8 }
 0x1bc   : > { %p1187_p11 = scmp.ne.s32.totalorder %s1677_s3, %s1186_s26  ;;  %p1192_p0 = scmp.lt.u32.totalorder %s1186_s26, %s1677_s3 }
 0x1be   : > { %p1188_p13 = pnand %p1187_p11, %p1699_p12 }
 0x1c0   : > { %p1189_p1 = pneg %p1188_p13 }
 0x1c2   : > { %p1194_p3 = pnand %p1192_p0, %p1189_p1 }
 0x1c4   : > { %1197 = shalt.err (!%p1194_p3)
}
 0x1c5   : > { %1073 = dma.vmem_to_hbm [thread:$0]  (%p1698_p8), %s739_s13, 16, %s1677_s3, [#allocation9]  }
 0x1c6   : > { %s1198_s8 = scalar_lea.vmem %s750_s20, 16  ;;  %p1700_p10 = pmov %p1698_p8 }
 0x1c7   : > { %p1199_p9 = scmp.ne.s32.totalorder %s750_s20, %s1198_s8  ;;  %s1204_s9 = scalar_lea.vmem %s750_s20, 32 }
 0x1c8   : > { %p1205_p5 = scmp.lt.s32.totalorder %s750_s20, %s750_s20  ;;  %p1206_p6 = scmp.lt.s32.totalorder %s1204_s9, %s1198_s8 }
 0x1c9   : > { %p1200_p2 = pnand %p1199_p9, %p1700_p10 }
 0x1ca   : > { %p1207_p11 = por %p1206_p6, %p1205_p5 }
 0x1cb   : > { %p1201_p4 = pneg %p1200_p2 }
 0x1cd   : > { %p1208_p12 = pnand %p1207_p11, %p1201_p4 }
 0x1cf   : > { %1211 = shalt.err (!%p1208_p12)
}
 0x1d0   : > { %s1212_s12 = scalar_lea.hbm %s1678_s4, 16  ;;  %p1701_p1 = pmov %p1698_p8 }
 0x1d1   : > { %p1213_p13 = scmp.ne.s32.totalorder %s1678_s4, %s1212_s12  ;;  %p1218_p8 = scmp.lt.u32.totalorder %s1212_s12, %s1678_s4 }
 0x1d3   : > { %p1214_p0 = pnand %p1213_p13, %p1701_p1 }
 0x1d5   : > { %p1215_p3 = pneg %p1214_p0 }
 0x1d7   : > { %p1220_p9 = pnand %p1218_p8, %p1215_p3 }
 0x1d9   : > { %1223 = shalt.err (!%p1220_p9)
}
 0x1da   : > { %p1702_p10 = pmov %p1701_p1  ;;  %p1703_p2 = pmov %p1701_p1 }
 0x1dc   : > { %1075 = dma.vmem_to_hbm [thread:$0]  (%p1702_p10), %s750_s20, 16, %s1678_s4, [#allocation9]  }
 0x1dd   : > { %1249 = dma.done.wait (%p1703_p2), [#allocation9], 32   ;;  %p1704_p4 = pmov %p1701_p1 }
 0x1df   : > { %1251 = vsyncadd (%p1704_p4), [#allocation9], 4294967264 }
 0x1e0 PF: > { %s769_s7 = sand.u32 1, %s1258_s15   ;;  %p1705_p5 = scmp.ne.s32.totalorder %s1688_s28, 0 }
 0x1e1   : > { %s770_s14 = scalar_lea.sflag [#allocation4], %s769_s7 }
 0x1e2   : > { %p1086_p6 = pnand %p853_p7, %p1705_p5 }
 0x1e4   : > { %1253 = dma.done.wait (!%p1086_p6), %s770_s14, 4096  }
 0x1e5   : > { %1255 = vsyncadd (!%p1086_p6), %s770_s14, 4294963200  ;;  %p20_p11 = scmp.ge.s32.totalorder %s1338_s21, 4   ;;  %s1706_s15 = smov %s1262_s16 }
 0x1e6   : > { %s1707_s16 = smov %s1266_s17  ;;  %s1708_s17 = smov %s1350_s24 }
 0x1e7   : > { %s1709_s18 = smov %s1338_s21  ;;  %22 = sbr.rel (!%p20_p11) target bundleno = 7 (0x7), region = 111 }
 0x1ee   :  { %775 = vsyncpa [#allocation3], 1 }
 0x1ef   :  { %777 = vsyncpa [#allocation3 + $0x1], 1 }
 0x1f0   :  { %778 = vsyncpa [#allocation6], 1 }
 0x1f1   :  { %779 = vsyncpa [#allocation4], 1 }
 0x1f2   :  { %781 = vsyncpa [#allocation4 + $0x1], 1 }
 0x1f3   :  { %782 = vsyncpa [#allocation9], 1 }

</bundles_post_ra>
